<compile_context>
chip_gen: v7x
topology: tpu7x:2x2x1
jax: 0.10.0
libtpu: 0.0.40
codegen_flags: <defaults>
</compile_context>

<pallas_src>
import jax
import jax.numpy as jnp
from jax.experimental import pallas as pl
from jax.experimental.pallas import tpu as pltpu


def _round_up(n, m):
    return ((n + m - 1) // m) * m


def autoencoder_kernel(x_ref,
                       w1_ref, b1_ref,
                       w2_ref, b2_ref,
                       w3_ref, b3_ref,
                       w4_ref, b4_ref,
                       o_ref):
    # Fused 4-layer MLP on the MXU; all intermediates live in vregs/VMEM.
    # f32 input is cast to bf16 here (in-kernel) to avoid a separate XLA
    # convert pass over x in HBM.  bf16 matmul inputs, f32 accumulation,
    # f32 bias-add/ReLU.
    x = x_ref[...].astype(jnp.bfloat16)

    h = jnp.dot(x, w1_ref[...], preferred_element_type=jnp.float32) + b1_ref[...]
    h = jnp.maximum(h, 0.0).astype(jnp.bfloat16)                    # ReLU -> bf16

    z = jnp.dot(h, w2_ref[...], preferred_element_type=jnp.float32) + b2_ref[...]
    z = jnp.maximum(z, 0.0).astype(jnp.bfloat16)                    # ReLU -> bf16

    d = jnp.dot(z, w3_ref[...], preferred_element_type=jnp.float32) + b3_ref[...]
    d = jnp.maximum(d, 0.0).astype(jnp.bfloat16)                    # ReLU -> bf16

    out = jnp.dot(d, w4_ref[...], preferred_element_type=jnp.float32) + b4_ref[...]
    o_ref[...] = out.astype(o_ref.dtype)


def _pick_block_b(B):
    # Memory/overhead-bound kernel -> large batch tiles.
    #   * tiny batches: single sublane-aligned tile (no wasted rows)
    #   * medium/large batches: at least 2 grid steps (so the "parallel" grid
    #     axis shards across v7x's 2 TensorCores), tile rounded to a multiple
    #     of 256, capped at 1024 rows.  At 1024 rows the double-buffered f32
    #     input/output tiles (~5 MiB each) plus intermediates stay well under
    #     the raised VMEM budget on all generations (incl. v7x's 64 MiB).
    if B <= 512:
        return _round_up(max(B, 8), 8)
    return min(1024, _round_up(pl.cdiv(B, 2), 256))


def esm_autoencoder_forward(x, params, *, block_b=None):
    """x: [B, input_dim] float32. params: dict of w1..w4 ([in,out]) and b1..b4."""
    B, D_in = x.shape
    hidden = params["w1"].shape[1]
    latent = params["w2"].shape[1]
    D_out = params["w4"].shape[1]

    # ---- parameter preprocessing (cheap, done outside the kernel) ----------
    # bf16 weights for the MXU, f32 biases for the VPU bias-add.
    # Zero-pad the latent dim to a full 128-lane vreg: exact through ReLU
    # (padded bias entries are 0 and ReLU(0) == 0).
    lat_pad = _round_up(latent, 128)
    w1 = params["w1"].astype(jnp.bfloat16)
    b1 = params["b1"].reshape(1, -1).astype(jnp.float32)
    w2 = jnp.pad(params["w2"], ((0, 0), (0, lat_pad - latent))).astype(jnp.bfloat16)
    b2 = jnp.pad(params["b2"].reshape(1, -1),
                 ((0, 0), (0, lat_pad - latent))).astype(jnp.float32)
    w3 = jnp.pad(params["w3"], ((0, lat_pad - latent), (0, 0))).astype(jnp.bfloat16)
    b3 = params["b3"].reshape(1, -1).astype(jnp.float32)
    w4 = params["w4"].astype(jnp.bfloat16)
    b4 = params["b4"].reshape(1, -1).astype(jnp.float32)

    # ---- batch tiling -------------------------------------------------------
    # No wrapper-side padding/slicing of x or the output: the grid is a cdiv
    # and Pallas masks the writes of the ragged trailing tile.
    if block_b is None:
        block_b = _pick_block_b(B)
    grid = (pl.cdiv(B, block_b),)

    def full_spec(arr):
        # Whole-array block, constant index -> DMA'd once, VMEM-resident.
        return pl.BlockSpec(arr.shape, lambda i: (0, 0))

    weights = (w1, b1, w2, b2, w3, b3, w4, b4)
    flops = 2 * B * (D_in * hidden + hidden * lat_pad
                     + lat_pad * hidden + hidden * D_out)
    bytes_accessed = (B * D_in * 4                      # f32 input
                      + B * D_out * 4                   # f32 output
                      + sum(int(a.size) * a.dtype.itemsize for a in weights))
    cost = pl.CostEstimate(flops=flops, transcendentals=0,
                           bytes_accessed=bytes_accessed)

    out = pl.pallas_call(
        autoencoder_kernel,
        out_shape=jax.ShapeDtypeStruct((B, D_out), jnp.float32),
        grid_spec=pltpu.PrefetchScalarGridSpec(
            num_scalar_prefetch=0,
            grid=grid,
            in_specs=[
                pl.BlockSpec((block_b, D_in), lambda i: (i, 0)),   # x tile
                full_spec(w1), full_spec(b1),
                full_spec(w2), full_spec(b2),
                full_spec(w3), full_spec(b3),
                full_spec(w4), full_spec(b4),
            ],
            out_specs=pl.BlockSpec((block_b, D_out), lambda i: (i, 0)),
        ),
        compiler_params=pltpu.CompilerParams(
            dimension_semantics=("parallel",),
            vmem_limit_bytes=40 * 1024 * 1024,          # large tiles need > default scoped VMEM
        ),
        cost_estimate=cost,
    )(x, *weights)

    return out


def init_params(key, input_dim=640, latent_dim=64, hidden=128):
    """Deterministic synthetic init (PyTorch-Linear-style uniform bounds)."""
    def linear(key, fan_in, fan_out):
        kw, kb = jax.random.split(key)
        bound = 1.0 / jnp.sqrt(fan_in)
        # stored as [in, out] so forward is x @ W + b
        w = jax.random.uniform(kw, (fan_in, fan_out), jnp.float32, -bound, bound)
        b = jax.random.uniform(kb, (1, fan_out), jnp.float32, -bound, bound)
        return w, b

    k1, k2, k3, k4 = jax.random.split(key, 4)
    w1, b1 = linear(k1, input_dim, hidden)     # encoder Linear(640,128)
    w2, b2 = linear(k2, hidden, latent_dim)    # encoder Linear(128,64)
    w3, b3 = linear(k3, latent_dim, hidden)    # decoder Linear(64,128)
    w4, b4 = linear(k4, hidden, input_dim)     # decoder Linear(128,640)
    return dict(w1=w1, b1=b1, w2=w2, b2=b2, w3=w3, b3=b3, w4=w4, b4=b4)


def reference_forward(x, p):
    """Same math as the kernel: bf16 matmul inputs, f32 accumulation."""
    def layer(a, w, b, relu):
        y = jnp.dot(a.astype(jnp.bfloat16), w.astype(jnp.bfloat16),
                    preferred_element_type=jnp.float32) + b.reshape(1, -1)
        return jnp.maximum(y, 0.0) if relu else y

    h = layer(x, p["w1"], p["b1"], True)
    z = layer(h, p["w2"], p["b2"], True)
    d = layer(z, p["w3"], p["b3"], True)
    return layer(d, p["w4"], p["b4"], False)


if __name__ == "__main__":
    input_dim, latent_dim = 640, 64
    batch = 16   # small demo batch; kernel tiles arbitrary batch sizes

    key = jax.random.PRNGKey(0)
    kx, kp = jax.random.split(key)
    x = jax.random.normal(kx, (batch, input_dim), dtype=jnp.float32)
    params = init_params(kp, input_dim=input_dim, latent_dim=latent_dim)

    out = esm_autoencoder_forward(x, params)
    out = jax.block_until_ready(out)

    ref = reference_forward(x, params)
    assert out.shape == (batch, input_dim)
    assert jnp.allclose(out, ref, atol=1e-2, rtol=1e-2), "mismatch vs reference"

    print("KERNEL_OK")
</pallas_src>

<mosaic_0001>
module attributes {stable_mosaic.version = 11 : i64} {
  func.func @autoencoder_kernel(%arg0: i32, %arg1: memref<16x640xf32, #tpu.memory_space<vmem>>, %arg2: memref<640x128xbf16, #tpu.memory_space<vmem>>, %arg3: memref<1x128xf32, #tpu.memory_space<vmem>>, %arg4: memref<128x128xbf16, #tpu.memory_space<vmem>>, %arg5: memref<1x128xf32, #tpu.memory_space<vmem>>, %arg6: memref<128x128xbf16, #tpu.memory_space<vmem>>, %arg7: memref<1x128xf32, #tpu.memory_space<vmem>>, %arg8: memref<128x640xbf16, #tpu.memory_space<vmem>>, %arg9: memref<1x640xf32, #tpu.memory_space<vmem>>, %arg10: memref<16x640xf32, #tpu.memory_space<vmem>>) attributes {dimension_semantics = [#tpu.dimension_semantics<parallel>], iteration_bounds = array<i64: 1>, scalar_prefetch = 0 : i64, scratch_operands = 0 : i64, tpu.core_type = #tpu.core_type<tc>, window_params = [{transform_indices = @transform_0, window_bounds = array<i64: 16, 640>}, {pipeline_mode = #tpu.pipeline_mode<synchronous>, transform_indices = @transform_1, window_bounds = array<i64: 640, 128>}, {pipeline_mode = #tpu.pipeline_mode<synchronous>, transform_indices = @transform_2, window_bounds = array<i64: 1, 128>}, {pipeline_mode = #tpu.pipeline_mode<synchronous>, transform_indices = @transform_3, window_bounds = array<i64: 128, 128>}, {pipeline_mode = #tpu.pipeline_mode<synchronous>, transform_indices = @transform_4, window_bounds = array<i64: 1, 128>}, {pipeline_mode = #tpu.pipeline_mode<synchronous>, transform_indices = @transform_5, window_bounds = array<i64: 128, 128>}, {pipeline_mode = #tpu.pipeline_mode<synchronous>, transform_indices = @transform_6, window_bounds = array<i64: 1, 128>}, {pipeline_mode = #tpu.pipeline_mode<synchronous>, transform_indices = @transform_7, window_bounds = array<i64: 128, 640>}, {pipeline_mode = #tpu.pipeline_mode<synchronous>, transform_indices = @transform_8, window_bounds = array<i64: 1, 640>}, {transform_indices = @transform_9, window_bounds = array<i64: 16, 640>}]} {
    %c0 = arith.constant 0 : index
    %c0_0 = arith.constant 0 : index
    %0 = vector.load %arg1[%c0, %c0_0] : memref<16x640xf32, #tpu.memory_space<vmem>>, vector<16x640xf32>
    %1 = arith.truncf %0 : vector<16x640xf32> to vector<16x640xbf16>
    %c0_1 = arith.constant 0 : index
    %c0_2 = arith.constant 0 : index
    %2 = vector.load %arg2[%c0_1, %c0_2] : memref<640x128xbf16, #tpu.memory_space<vmem>>, vector<640x128xbf16>
    %cst = arith.constant dense<0.000000e+00> : vector<16x128xf32>
    %3 = tpu.matmul %1, %2, %cst {dimension_numbers = #tpu.dot_dimension_numbers<[1], [0], [0], [1], [0, 0, 1, 1], [], []>} : vector<16x640xbf16>, vector<640x128xbf16>, vector<16x128xf32> -> vector<16x128xf32>
    %c0_3 = arith.constant 0 : index
    %c0_4 = arith.constant 0 : index
    %4 = vector.load %arg3[%c0_3, %c0_4] : memref<1x128xf32, #tpu.memory_space<vmem>>, vector<1x128xf32>
    %5 = vector.broadcast %4 : vector<1x128xf32> to vector<16x128xf32>
    %6 = arith.addf %3, %5 : vector<16x128xf32>
    %cst_5 = arith.constant 0.000000e+00 : f32
    %7 = vector.broadcast %cst_5 : f32 to vector<16x128xf32>
    %8 = arith.maximumf %6, %7 : vector<16x128xf32>
    %9 = arith.truncf %8 : vector<16x128xf32> to vector<16x128xbf16>
    %c0_6 = arith.constant 0 : index
    %c0_7 = arith.constant 0 : index
    %10 = vector.load %arg4[%c0_6, %c0_7] : memref<128x128xbf16, #tpu.memory_space<vmem>>, vector<128x128xbf16>
    %cst_8 = arith.constant dense<0.000000e+00> : vector<16x128xf32>
    %11 = tpu.matmul %9, %10, %cst_8 {dimension_numbers = #tpu.dot_dimension_numbers<[1], [0], [0], [1], [0, 0, 1, 1], [], []>} : vector<16x128xbf16>, vector<128x128xbf16>, vector<16x128xf32> -> vector<16x128xf32>
    %c0_9 = arith.constant 0 : index
    %c0_10 = arith.constant 0 : index
    %12 = vector.load %arg5[%c0_9, %c0_10] : memref<1x128xf32, #tpu.memory_space<vmem>>, vector<1x128xf32>
    %13 = vector.broadcast %12 : vector<1x128xf32> to vector<16x128xf32>
    %14 = arith.addf %11, %13 : vector<16x128xf32>
    %cst_11 = arith.constant 0.000000e+00 : f32
    %15 = vector.broadcast %cst_11 : f32 to vector<16x128xf32>
    %16 = arith.maximumf %14, %15 : vector<16x128xf32>
    %17 = arith.truncf %16 : vector<16x128xf32> to vector<16x128xbf16>
    %c0_12 = arith.constant 0 : index
    %c0_13 = arith.constant 0 : index
    %18 = vector.load %arg6[%c0_12, %c0_13] : memref<128x128xbf16, #tpu.memory_space<vmem>>, vector<128x128xbf16>
    %cst_14 = arith.constant dense<0.000000e+00> : vector<16x128xf32>
    %19 = tpu.matmul %17, %18, %cst_14 {dimension_numbers = #tpu.dot_dimension_numbers<[1], [0], [0], [1], [0, 0, 1, 1], [], []>} : vector<16x128xbf16>, vector<128x128xbf16>, vector<16x128xf32> -> vector<16x128xf32>
    %c0_15 = arith.constant 0 : index
    %c0_16 = arith.constant 0 : index
    %20 = vector.load %arg7[%c0_15, %c0_16] : memref<1x128xf32, #tpu.memory_space<vmem>>, vector<1x128xf32>
    %21 = vector.broadcast %20 : vector<1x128xf32> to vector<16x128xf32>
    %22 = arith.addf %19, %21 : vector<16x128xf32>
    %cst_17 = arith.constant 0.000000e+00 : f32
    %23 = vector.broadcast %cst_17 : f32 to vector<16x128xf32>
    %24 = arith.maximumf %22, %23 : vector<16x128xf32>
    %25 = arith.truncf %24 : vector<16x128xf32> to vector<16x128xbf16>
    %c0_18 = arith.constant 0 : index
    %c0_19 = arith.constant 0 : index
    %26 = vector.load %arg8[%c0_18, %c0_19] : memref<128x640xbf16, #tpu.memory_space<vmem>>, vector<128x640xbf16>
    %cst_20 = arith.constant dense<0.000000e+00> : vector<16x640xf32>
    %27 = tpu.matmul %25, %26, %cst_20 {dimension_numbers = #tpu.dot_dimension_numbers<[1], [0], [0], [1], [0, 0, 1, 1], [], []>} : vector<16x128xbf16>, vector<128x640xbf16>, vector<16x640xf32> -> vector<16x640xf32>
    %c0_21 = arith.constant 0 : index
    %c0_22 = arith.constant 0 : index
    %28 = vector.load %arg9[%c0_21, %c0_22] : memref<1x640xf32, #tpu.memory_space<vmem>>, vector<1x640xf32>
    %29 = vector.broadcast %28 : vector<1x640xf32> to vector<16x640xf32>
    %30 = arith.addf %27, %29 : vector<16x640xf32>
    %c0_23 = arith.constant 0 : index
    %c0_24 = arith.constant 0 : index
    %31 = vector.load %arg10[%c0_23, %c0_24] : memref<16x640xf32, #tpu.memory_space<vmem>>, vector<16x640xf32>
    tpu.vector_store %arg10[%c0_23, %c0_24], %30 {strides = array<i32>} : memref<16x640xf32, #tpu.memory_space<vmem>>, vector<16x640xf32>,
    return
  }
  func.func @transform_0(%arg0: i32) -> (i32, i32) {
    %c0_i32 = arith.constant 0 : i32
    %c0_i32_0 = arith.constant 0 : i32
    return %arg0, %c0_i32 : i32, i32
  }
  func.func @transform_1(%arg0: i32) -> (i32, i32) {
    %c0_i32 = arith.constant 0 : i32
    %c0_i32_0 = arith.constant 0 : i32
    %c0_i32_1 = arith.constant 0 : i32
    return %c0_i32, %c0_i32_0 : i32, i32
  }
  func.func @transform_2(%arg0: i32) -> (i32, i32) {
    %c0_i32 = arith.constant 0 : i32
    %c0_i32_0 = arith.constant 0 : i32
    %c0_i32_1 = arith.constant 0 : i32
    return %c0_i32, %c0_i32_0 : i32, i32
  }
  func.func @transform_3(%arg0: i32) -> (i32, i32) {
    %c0_i32 = arith.constant 0 : i32
    %c0_i32_0 = arith.constant 0 : i32
    %c0_i32_1 = arith.constant 0 : i32
    return %c0_i32, %c0_i32_0 : i32, i32
  }
  func.func @transform_4(%arg0: i32) -> (i32, i32) {
    %c0_i32 = arith.constant 0 : i32
    %c0_i32_0 = arith.constant 0 : i32
    %c0_i32_1 = arith.constant 0 : i32
    return %c0_i32, %c0_i32_0 : i32, i32
  }
  func.func @transform_5(%arg0: i32) -> (i32, i32) {
    %c0_i32 = arith.constant 0 : i32
    %c0_i32_0 = arith.constant 0 : i32
    %c0_i32_1 = arith.constant 0 : i32
    return %c0_i32, %c0_i32_0 : i32, i32
  }
  func.func @transform_6(%arg0: i32) -> (i32, i32) {
    %c0_i32 = arith.constant 0 : i32
    %c0_i32_0 = arith.constant 0 : i32
    %c0_i32_1 = arith.constant 0 : i32
    return %c0_i32, %c0_i32_0 : i32, i32
  }
  func.func @transform_7(%arg0: i32) -> (i32, i32) {
    %c0_i32 = arith.constant 0 : i32
    %c0_i32_0 = arith.constant 0 : i32
    %c0_i32_1 = arith.constant 0 : i32
    return %c0_i32, %c0_i32_0 : i32, i32
  }
  func.func @transform_8(%arg0: i32) -> (i32, i32) {
    %c0_i32 = arith.constant 0 : i32
    %c0_i32_0 = arith.constant 0 : i32
    %c0_i32_1 = arith.constant 0 : i32
    return %c0_i32, %c0_i32_0 : i32, i32
  }
  func.func @transform_9(%arg0: i32) -> (i32, i32) {
    %c0_i32 = arith.constant 0 : i32
    %c0_i32_0 = arith.constant 0 : i32
    return %arg0, %c0_i32 : i32, i32
  }
}

</mosaic_0001>

<bundles_post_ra>
// kernel: tpu_custom_call.1
= control target key start
LH: loop header
LB: loop body
LE: loop exit
PB: predicated region body
PF: predicated region fallthrough
CT: control target
= control target key end

     0   :  { %14 = vsyncpa [#allocation3], 0  ;;  %s1969_s0 = inlined_call_operand.hbm [shape: f32[16,640], index: 0, kind: input, shape index: {}]   ;;  %s1970_s1 = inlined_call_operand.hbm [shape: bf16[640,128], index: 1, kind: input, shape index: {}]   ;;  %s1971_s2 = inlined_call_operand.vmem [shape: f32[1,128], index: 2, kind: input, shape index: {}]   ;;  %s1972_s3 = inlined_call_operand.hbm [shape: bf16[128,128], index: 3, kind: input, shape index: {}]   ;;  %s1973_s4 = inlined_call_operand.vmem [shape: f32[1,128], index: 4, kind: input, shape index: {}]   ;;  %s1974_s5 = inlined_call_operand.hbm [shape: bf16[128,128], index: 5, kind: input, shape index: {}]   ;;  %s1975_s6 = inlined_call_operand.vmem [shape: f32[1,128], index: 6, kind: input, shape index: {}]   ;;  %s1976_s7 = inlined_call_operand.hbm [shape: bf16[128,640], index: 7, kind: input, shape index: {}]   ;;  %s1977_s8 = inlined_call_operand.vmem [shape: f32[1,640], index: 8, kind: input, shape index: {}]   ;;  %s1978_s9 = inlined_call_operand.hbm [shape: f32[16,640], index: 9, kind: output, shape index: {}]  }
   0x1   :  { %15 = vsyncpa [#allocation6], 0 }
   0x2   :  { %16 = vsyncpa [#allocation9], 0 }
   0x3   :  { %17 = vsyncpa [#allocation4], 0  ;;  %s1765_s30 = smov [#allocation5]   ;;  %s1625_s13 = scalar_lea.hbm %s1970_s1, 5120 }
   0x4   :  { %s35_s10 = sshll.u32 %s1765_s30, 4  ;;  %p1626_p0 = scmp.ne.s32.totalorder %s1970_s1, %s1625_s13  ;;  %s36_s10 = int_to_ptr.vmem [resolvable:$true] %s35_s10 }
   0x5   :  { %p1629_p1 = scmp.lt.u32.totalorder %s1625_s13, %s1970_s1 }
   0x7   :  { %p1631_p2 = pnand %p1629_p1, %p1626_p0 }
   0x9   :  { %1634 = shalt.err (!%p1631_p2)
}
   0xa   :  { %s1635_s18 = scalar_lea.vmem %s36_s10, 5120  ;;  %p1640_p4 = scmp.lt.s32.totalorder %s36_s10, %s36_s10 }
   0xb   :  { %p1636_p3 = scmp.ne.s32.totalorder %s36_s10, %s1635_s18  ;;  %p1641_p5 = scmp.lt.s32.totalorder %s1635_s18, %s1635_s18 }
   0xd   :  { %p1642_p6 = por %p1641_p5, %p1640_p4 }
   0xf   :  { %p1643_p7 = pnand %p1642_p6, %p1636_p3 }
  0x11   :  { %1646 = shalt.err (!%p1643_p7)
}
  0x12   :  { %s1766_s19 = smov 64   ;;  %s1767_s20 = smov 4  }
  0x13   :  { %41 = dma.hbm_to_vmem [thread:$0]  %s1970_s1, 5120, %s36_s10, [#allocation6], %s1766_s19, %s1766_s19, %s1767_s20  }
  0x14   :  { %s1768_s23 = smov [#allocation8]   ;;  %s1769_s25 = smov [#allocation2]  }
  0x15   :  { %s63_s24 = sshll.u32 %s1768_s23, 4  ;;  %s23_s26 = sshll.u32 %s1769_s25, 4  ;;  %s64_s24 = int_to_ptr.vmem [resolvable:$true] %s63_s24  ;;  %s24_s26 = int_to_ptr.vmem [resolvable:$true] %s23_s26 }
  0x16   :  { %s1647_s29 = scalar_lea.hbm %s1974_s5, 1024 }
  0x17   :  { %p1648_p8 = scmp.ne.s32.totalorder %s1974_s5, %s1647_s29  ;;  %p1651_p9 = scmp.lt.u32.totalorder %s1647_s29, %s1974_s5 }
  0x19   :  { %p1653_p10 = pnand %p1651_p9, %p1648_p8 }
  0x1b   :  { %1656 = shalt.err (!%p1653_p10)
}
  0x1c   :  { %s1657_s1 = scalar_lea.vmem %s64_s24, 1024  ;;  %p1662_p12 = scmp.lt.s32.totalorder %s64_s24, %s64_s24 }
  0x1d   :  { %p1658_p11 = scmp.ne.s32.totalorder %s64_s24, %s1657_s1  ;;  %p1663_p13 = scmp.lt.s32.totalorder %s1657_s1, %s1657_s1 }
  0x1f   :  { %p1664_p0 = por %p1663_p13, %p1662_p12 }
  0x21   :  { %p1665_p1 = pnand %p1664_p0, %p1658_p11 }
  0x23   :  { %1668 = shalt.err (!%p1665_p1)
}
  0x24   :  { %69 = dma.hbm_to_vmem [thread:$0]  %s1974_s5, 1024, %s64_s24, [#allocation9], %s1766_s19, %s1766_s19, %s1767_s20  }
  0x25   :  { %s1669_s17 = scalar_lea.hbm %s1969_s0, 1280 }
  0x26   :  { %p1670_p2 = scmp.ne.s32.totalorder %s1969_s0, %s1669_s17  ;;  %p1673_p3 = scmp.lt.u32.totalorder %s1669_s17, %s1969_s0 }
  0x28   :  { %p1675_p4 = pnand %p1673_p3, %p1670_p2 }
  0x2a   :  { %1678 = shalt.err (!%p1675_p4)
}
  0x2b   :  { %s1679_s25 = scalar_lea.vmem %s24_s26, 1280  ;;  %p1684_p6 = scmp.lt.s32.totalorder %s24_s26, %s24_s26 }
  0x2c   :  { %p1680_p5 = scmp.ne.s32.totalorder %s24_s26, %s1679_s25  ;;  %p1685_p7 = scmp.lt.s32.totalorder %s1679_s25, %s1679_s25 }
  0x2e   :  { %p1686_p8 = por %p1685_p7, %p1684_p6 }
  0x30   :  { %p1687_p9 = pnand %p1686_p8, %p1680_p5 }
  0x32   :  { %1690 = shalt.err (!%p1687_p9)
}
  0x33   :  { %s1770_s5 = smov 640   ;;  %s1771_s24 = smov 40  }
  0x34   :  { %29 = dma.hbm_to_vmem [thread:$0]  %s1969_s0, 1280, %s24_s26, [#allocation3], %s1770_s5, %s1770_s5, %s1771_s24  }
  0x35   :  { %s1772_s29 = smov [#allocation7]   ;;  %s1773_s11 = smov [#allocation10]  }
  0x36   :  { %s49_s30 = sshll.u32 %s1772_s29, 4  ;;  %s77_s12 = sshll.u32 %s1773_s11, 4  ;;  %s50_s30 = int_to_ptr.vmem [resolvable:$true] %s49_s30  ;;  %s78_s12 = int_to_ptr.vmem [resolvable:$true] %s77_s12 }
  0x37   :  { %s1691_s10 = scalar_lea.hbm %s1972_s3, 1024 }
  0x38   :  { %p1692_p10 = scmp.ne.s32.totalorder %s1972_s3, %s1691_s10  ;;  %p1695_p11 = scmp.lt.u32.totalorder %s1691_s10, %s1972_s3 }
  0x3a   :  { %p1697_p12 = pnand %p1695_p11, %p1692_p10 }
  0x3c   :  { %1700 = shalt.err (!%p1697_p12)
}
  0x3d   :  { %s1701_s0 = scalar_lea.vmem %s50_s30, 1024  ;;  %p1706_p0 = scmp.lt.s32.totalorder %s50_s30, %s50_s30 }
  0x3e   :  { %p1702_p13 = scmp.ne.s32.totalorder %s50_s30, %s1701_s0  ;;  %p1707_p1 = scmp.lt.s32.totalorder %s1701_s0, %s1701_s0 }
  0x40   :  { %p1708_p2 = por %p1707_p1, %p1706_p0 }
  0x42   :  { %p1709_p3 = pnand %p1708_p2, %p1702_p13 }
  0x44   :  { %1712 = shalt.err (!%p1709_p3)
}
  0x45   :  { %55 = dma.hbm_to_vmem [thread:$0]  %s1972_s3, 1024, %s50_s30, [#allocation6], %s1766_s19, %s1766_s19, %s1767_s20  }
  0x46   :  { %s1713_s23 = scalar_lea.hbm %s1976_s7, 5120 }
  0x47   :  { %p1714_p4 = scmp.ne.s32.totalorder %s1976_s7, %s1713_s23  ;;  %p1717_p5 = scmp.lt.u32.totalorder %s1713_s23, %s1976_s7 }
  0x49   :  { %p1719_p6 = pnand %p1717_p5, %p1714_p4 }
  0x4b   :  { %1722 = shalt.err (!%p1719_p6)
}
  0x4c   :  { %s1723_s11 = scalar_lea.vmem %s78_s12, 5120  ;;  %p1728_p8 = scmp.lt.s32.totalorder %s78_s12, %s78_s12 }
  0x4d   :  { %p1724_p7 = scmp.ne.s32.totalorder %s78_s12, %s1723_s11  ;;  %p1729_p9 = scmp.lt.s32.totalorder %s1723_s11, %s1723_s11 }
  0x4f   :  { %p1730_p10 = por %p1729_p9, %p1728_p8 }
  0x51   :  { %p1731_p11 = pnand %p1730_p10, %p1724_p7 }
  0x53   :  { %1734 = shalt.err (!%p1731_p11)
}
  0x54   :  { %s1774_s3 = smov 320   ;;  %s1775_s19 = smov 20  }
  0x55   :  { %83 = dma.hbm_to_vmem [thread:$0]  %s1976_s7, 5120, %s78_s12, [#allocation9], %s1774_s3, %s1774_s3, %s1775_s19  }
  0x56   :  { %1757 = dma.done.wait [#allocation3], 1280  }
  0x57   :  { %1758 = vsyncadd [#allocation3], 4294966016 }
  0x58   :  { %1759 = dma.done.wait [#allocation6], 6144  }
  0x59   :  { %1760 = vsyncadd [#allocation6], 4294961152 }
  0x5a   :  { %1761 = dma.done.wait [#allocation9], 6144  }
  0x5b   :  { %1762 = vsyncadd [#allocation9], 4294961152  ;;  %v1513_v0 = vld [vmem:[#allocation5 + $0x40] sm:$0xff]   ;;  %v1517_v4 = vld [vmem:[#allocation5 + $0x48] sm:$0xff]   ;;  %v1776_v36 = vmov 0.0   ;;  %vm1777_vm0 = vmmov 0  }
  0x5c   :  { %v1514_v1 = vld [vmem:[#allocation5] sm:$0xff]   ;;  %1338 = vmatprep.subr.bf16.mxu0 %v1513_v0  ;;  %v1518_v5 = vld [vmem:[#allocation5 + $0x8] sm:$0xff]   ;;  %v1521_v8 = vld [vmem:[#allocation5 + $0x50] sm:$0xff]  }
  0x5d   :  { %v1515_v2 = vld [vmem:[#allocation5 + $0xc0] sm:$0xff]   ;;  %1339 = vmatpush3.bf16.msra.mxu0 %v1514_v1  ;;  %v1519_v6 = vld [vmem:[#allocation5 + $0xc8] sm:$0xff]   ;;  %v1522_v9 = vld [vmem:[#allocation5 + $0x10] sm:$0xff]  }
  0x5e   :  { %v1516_v3 = vld [vmem:[#allocation5 + $0x80] sm:$0xff]   ;;  %1360 = vmatprep.subr.bf16.mxu1 %v1515_v2  ;;  %1340 = vmatprep.subr.bf16.mxu0 %v1517_v4  ;;  %v1520_v7 = vld [vmem:[#allocation5 + $0x88] sm:$0xff]   ;;  %v1523_v10 = vld [vmem:[#allocation5 + $0xd0] sm:$0xff]  }
  0x5f   :  { %1361 = vmatpush3.bf16.msra.mxu1 %v1516_v3  ;;  %v1524_v11 = vld [vmem:[#allocation5 + $0x90] sm:$0xff]   ;;  %v1525_v12 = vld [vmem:[#allocation5 + $0x58] sm:$0xff]   ;;  %v1529_v16 = vld [vmem:[#allocation5 + $0x60] sm:$0xff]  }
  0x60   :  { %1362 = vmatprep.subr.bf16.mxu1 %v1519_v6  ;;  %v1526_v13 = vld [vmem:[#allocation5 + $0x18] sm:$0xff]   ;;  %v1530_v17 = vld [vmem:[#allocation5 + $0x20] sm:$0xff]   ;;  %v1533_v20 = vld [vmem:[#allocation5 + $0x68] sm:$0xff]  }
  0x61   :  { %1341 = vmatpush3.bf16.msra.mxu0 %v1518_v5  ;;  %v1527_v14 = vld [vmem:[#allocation5 + $0xd8] sm:$0xff]   ;;  %v1531_v18 = vld [vmem:[#allocation5 + $0xe0] sm:$0xff]   ;;  %v1534_v21 = vld [vmem:[#allocation5 + $0x28] sm:$0xff]  }
  0x62   :  { %1342 = vmatprep.subr.bf16.mxu0 %v1521_v8  ;;  %v1528_v15 = vld [vmem:[#allocation5 + $0x98] sm:$0xff]   ;;  %v1532_v19 = vld [vmem:[#allocation5 + $0xa0] sm:$0xff]   ;;  %v1535_v22 = vld [vmem:[#allocation5 + $0xe8] sm:$0xff]  }
  0x63   :  { %1363 = vmatpush3.bf16.msra.mxu1 %v1520_v7  ;;  %v1536_v23 = vld [vmem:[#allocation5 + $0xa8] sm:$0xff]   ;;  %v1537_v24 = vld [vmem:[#allocation5 + $0x70] sm:$0xff]   ;;  %v1541_v28 = vld [vmem:[#allocation5 + $0x78] sm:$0xff]  }
  0x64   :  { %1364 = vmatprep.subr.bf16.mxu1 %v1523_v10  ;;  %v1538_v25 = vld [vmem:[#allocation5 + $0x30] sm:$0xff]   ;;  %v1542_v29 = vld [vmem:[#allocation5 + $0x38] sm:$0xff]   ;;  %v108_v32 = vld [vmem:[#allocation2 + $0x30] sm:$0xff] }
  0x65   :  { %1343 = vmatpush3.bf16.msra.mxu0 %v1522_v9  ;;  %v1539_v26 = vld [vmem:[#allocation5 + $0xf0] sm:$0xff]   ;;  %v1543_v30 = vld [vmem:[#allocation5 + $0xf8] sm:$0xff]   ;;  %v105_v38 = vld [vmem:[#allocation2 + $0x18] sm:$0xff] }
  0x66   :  { %1344 = vmatprep.subr.bf16.mxu0 %v1525_v12  ;;  %v1540_v27 = vld [vmem:[#allocation5 + $0xb0] sm:$0xff]   ;;  %v103_v31 = vld [vmem:[#allocation2 + $0x8] sm:$0xff]  ;;  %v1545_v42 = vld [vmem:[#allocation5 + $0x100] sm:$0xff]  }
  0x67   :  { %1365 = vmatpush3.bf16.msra.mxu1 %v1524_v11  ;;  %v113_v33 = vpack.c.bf16 %v108_v32, %v103_v31  ;;  %v1544_v34 = vld [vmem:[#allocation5 + $0xb8] sm:$0xff]   ;;  %v102_v35 = vld [vmem:[#allocation2] sm:$0xff]  ;;  %v104_v43 = vld [vmem:[#allocation2 + $0x10] sm:$0xff] }
  0x68   :  { %1366 = vmatprep.subr.bf16.mxu1 %v1527_v14  ;;  %v107_v37 = vld [vmem:[#allocation2 + $0x28] sm:$0xff]  ;;  %v110_v39 = vld [vmem:[#allocation2 + $0x40] sm:$0xff]  ;;  %v109_v44 = vld [vmem:[#allocation2 + $0x38] sm:$0xff] }
  0x69   :  { %1345 = vmatpush3.bf16.msra.mxu0 %v1526_v13  ;;  %476 = vmatprep.mubr.bf16.mxu0 %v113_v33  ;;  %v112_v40 = vpack.c.bf16 %v107_v37, %v102_v35  ;;  %v115_v41 = vpack.c.bf16 %v110_v39, %v105_v38  ;;  %v114_v45 = vpack.c.bf16 %v109_v44, %v104_v43  ;;  %v1546_v46 = vld [vmem:[#allocation5 + $0x108] sm:$0xff]   ;;  %v1547_v47 = vld [vmem:[#allocation5 + $0x110] sm:$0xff]   ;;  %v1548_v48 = vld [vmem:[#allocation5 + $0x118] sm:$0xff]  }
  0x6a   :  { %1346 = vmatprep.subr.bf16.mxu0 %v1529_v16  ;;  %v1549_v49 = vld [vmem:[#allocation5 + $0x120] sm:$0xff]   ;;  %v1550_v50 = vld [vmem:[#allocation5 + $0x128] sm:$0xff]   ;;  %v1551_v51 = vld [vmem:[#allocation5 + $0x130] sm:$0xff]  }
  0x6b   :  { %1367 = vmatpush3.bf16.msra.mxu1 %v1528_v15  ;;  %517 = vmatprep.mubr.bf16.mxu1 %v115_v41  ;;  %v1552_v52 = vld [vmem:[#allocation5 + $0x138] sm:$0xff]   ;;  %v106_v53 = vld [vmem:[#allocation2 + $0x20] sm:$0xff]  ;;  %v1553_v56 = vld [vmem:[#allocation7] sm:$0xff]  }
  0x6c   :  { %1368 = vmatprep.subr.bf16.mxu1 %v1531_v18  ;;  %v111_v54 = vld [vmem:[#allocation2 + $0x48] sm:$0xff]  ;;  %v1554_v57 = vld [vmem:[#allocation7 + $0x8] sm:$0xff]   ;;  %v1555_v58 = vld [vmem:[#allocation7 + $0x10] sm:$0xff]  }
  0x6d   :  { %1347 = vmatpush3.bf16.msra.mxu0 %v1530_v17  ;;  %v116_v55 = vpack.c.bf16 %v111_v54, %v106_v53  ;;  %v1556_v59 = vld [vmem:[#allocation7 + $0x18] sm:$0xff]   ;;  %v1557_v60 = vld [vmem:[#allocation7 + $0x20] sm:$0xff]   ;;  %v1558_v61 = vld [vmem:[#allocation7 + $0x28] sm:$0xff]  }
  0x6e   :  { %1348 = vmatprep.subr.bf16.mxu0 %v1533_v20  ;;  %v1559_v62 = vld [vmem:[#allocation7 + $0x30] sm:$0xff]   ;;  %v1560_v63 = vld [vmem:[#allocation7 + $0x38] sm:$0xff]   ;;  %v1561_v0 = vld [vmem:[#allocation8] sm:$0xff]  }
  0x6f   :  { %1369 = vmatpush3.bf16.msra.mxu1 %v1532_v19  ;;  %v1562_v1 = vld [vmem:[#allocation8 + $0x8] sm:$0xff]   ;;  %v1563_v2 = vld [vmem:[#allocation8 + $0x10] sm:$0xff]   ;;  %v1564_v3 = vld [vmem:[#allocation8 + $0x18] sm:$0xff]  }
  0x70   :  { %1370 = vmatprep.subr.bf16.mxu1 %v1535_v22  ;;  %v1565_v4 = vld [vmem:[#allocation8 + $0x20] sm:$0xff]   ;;  %v1566_v5 = vld [vmem:[#allocation8 + $0x28] sm:$0xff]   ;;  %v1239_v7 = vld [vmem:[%s1971_s2] ss:$0 sm:$0xff] }
  0x71   :  { %1349 = vmatpush3.bf16.msra.mxu0 %v1534_v21  ;;  %v1567_v32 = vld [vmem:[#allocation8 + $0x30] sm:$0xff]   ;;  %v1568_v33 = vld [vmem:[#allocation8 + $0x38] sm:$0xff]   ;;  %v1574_v37 = vld [vmem:[#allocation10 + $0xc] ss:$20 sps:$4 sm:$0xff]  }
  0x72   :  { %1350 = vmatprep.subr.bf16.mxu0 %v1537_v24  ;;  %v1571_v35 = vld [vmem:[#allocation10 + $0x4] ss:$20 sps:$4 sm:$0xff]   ;;  %v1577_v38 = vld [vmem:[#allocation10 + $0x2c] ss:$20 sps:$4 sm:$0xff]   ;;  %v1575_v39 = vld [vmem:[#allocation10 + $0x28] ss:$20 sps:$4 sm:$0xff]  }
  0x73   :  { %1371 = vmatpush3.bf16.msra.mxu1 %v1536_v23  ;;  %v1581_v41 = vld [vmem:[#allocation10 + $0x50] ss:$20 sps:$4 sm:$0xff]   ;;  %v1587_v43 = vld [vmem:[#allocation10 + $0x78] ss:$20 sps:$4 sm:$0xff]  }
  0x74   :  { %1372 = vmatprep.subr.bf16.mxu1 %v1539_v26  ;;  %v1595_v44 = vld [vmem:[#allocation10 + $0xa4] ss:$20 sps:$4 sm:$0xff]  }
  0x75   :  { %1351 = vmatpush3.bf16.msra.mxu0 %v1538_v25 }
  0x76   :  { %1352 = vmatprep.subr.bf16.mxu0 %v1541_v28 }
  0x77   :  { %1373 = vmatpush3.bf16.msra.mxu1 %v1540_v27 }
  0x78   :  { %1374 = vmatprep.subr.bf16.mxu1 %v1543_v30 }
  0x79   :  { %1353 = vmatpush3.bf16.msra.mxu0 %v1542_v29 }
  0x7a   :  { %1418 = vmatprep.subr.bf16.mxu0 %v1776_v36 }
  0x7b   :  { %1375 = vmatpush3.bf16.msra.mxu1 %v1544_v34  ;;  %v1569_v34 = vld [vmem:[#allocation10] ss:$20 sps:$4 sm:$0xff]  }
  0x7c   :  { %1438 = vmatprep.subr.bf16.mxu1 %v1776_v36  ;;  %477 = vmatmul.mubr.bf16.vlgmr.msra.gmra.mrb[0].mxu0 %v112_v40  ;;  %v1583_v40 = vld [vmem:[#allocation10 + $0x54] ss:$20 sps:$4 sm:$0xff]  }
  0x7d   :  { %1419 = vmatpush3.bf16.msra.mxu0 %v1545_v42  ;;  %1434 = vmatprep.mubr.msk.bf16.mxu0 %vm1777_vm0, %v1776_v36  ;;  %v1589_v42 = vld [vmem:[#allocation10 + $0x7c] ss:$20 sps:$4 sm:$0xff]  }
  0x7e   :  { %518 = vmatmul.mubr.bf16.vlgmr.msra.gmra.mrb[0].mxu1 %v114_v45  ;;  %1420 = vmatprep.subr.bf16.mxu0 %v1776_v36  ;;  %v1593_v45 = vld [vmem:[#allocation10 + $0xa0] ss:$20 sps:$4 sm:$0xff]  }
  0x7f   :  { %1454 = vmatprep.mubr.msk.bf16.mxu1 %vm1777_vm0, %v1776_v36  ;;  %1439 = vmatpush3.bf16.msra.mxu1 %v1553_v56 }
  0x80   :  { %1440 = vmatprep.subr.bf16.mxu1 %v1776_v36 }
  0x81   :  { %1421 = vmatpush3.bf16.msra.mxu0 %v1546_v46  ;;  %v1601_v46 = vld [vmem:[#allocation10 + $0xcc] ss:$20 sps:$4 sm:$0xff]  }
  0x82   :  { %1422 = vmatprep.subr.bf16.mxu0 %v1776_v36 }
  0x83   :  { %1441 = vmatpush3.bf16.msra.mxu1 %v1554_v57  ;;  %v1572_v57 = vld [vmem:[#allocation10 + $0x8] ss:$20 sps:$4 sm:$0xff]  }
  0x84   :  { %1442 = vmatprep.subr.bf16.mxu1 %v1776_v36 }
  0x85   :  { %1423 = vmatpush3.bf16.msra.mxu0 %v1547_v47  ;;  %v1599_v47 = vld [vmem:[#allocation10 + $0xc8] ss:$20 sps:$4 sm:$0xff]  }
  0x86   :  { %1424 = vmatprep.subr.bf16.mxu0 %v1776_v36 }
  0x87   :  { %1443 = vmatpush3.bf16.msra.mxu1 %v1555_v58 }
  0x88   :  { %1444 = vmatprep.subr.bf16.mxu1 %v1776_v36 }
  0x89   :  { %1425 = vmatpush3.bf16.msra.mxu0 %v1548_v48  ;;  %v1280_v48 = vld [vmem:[%s1973_s4] ss:$0 sm:$0xff] }
  0x8a   :  { %1426 = vmatprep.subr.bf16.mxu0 %v1776_v36 }
  0x8b   :  { %1445 = vmatpush3.bf16.msra.mxu1 %v1556_v59  ;;  %v1580_v59 = vld [vmem:[#allocation10 + $0x34] ss:$20 sps:$4 sm:$0xff]  }
  0x8c   :  { %1446 = vmatprep.subr.bf16.mxu1 %v1776_v36 }
  0x8d   :  { %1427 = vmatpush3.bf16.msra.mxu0 %v1549_v49 }
  0x8e   :  { %1428 = vmatprep.subr.bf16.mxu0 %v1776_v36 }
  0x8f   :  { %1447 = vmatpush3.bf16.msra.mxu1 %v1557_v60  ;;  %v1578_v60 = vld [vmem:[#allocation10 + $0x30] ss:$20 sps:$4 sm:$0xff]  }
  0x90   :  { %1448 = vmatprep.subr.bf16.mxu1 %v1776_v36 }
  0x91   :  { %1429 = vmatpush3.bf16.msra.mxu0 %v1550_v50 }
  0x92   :  { %1430 = vmatprep.subr.bf16.mxu0 %v1776_v36 }
  0x93   :  { %1449 = vmatpush3.bf16.msra.mxu1 %v1558_v61  ;;  %v1586_v61 = vld [vmem:[#allocation10 + $0x5c] ss:$20 sps:$4 sm:$0xff]  }
  0x94   :  { %1450 = vmatprep.subr.bf16.mxu1 %v1776_v36 }
  0x95   :  { %1431 = vmatpush3.bf16.msra.mxu0 %v1551_v51 }
  0x96   :  { %1432 = vmatprep.subr.bf16.mxu0 %v1776_v36 }
  0x97   :  { %1451 = vmatpush3.bf16.msra.mxu1 %v1559_v62  ;;  %v1584_v62 = vld [vmem:[#allocation10 + $0x58] ss:$20 sps:$4 sm:$0xff]  }
  0x98   :  { %1452 = vmatprep.subr.bf16.mxu1 %v1776_v36 }
  0x99   :  { %1433 = vmatpush3.bf16.msra.mxu0 %v1552_v52 }
  0x9a   :  { %1458 = vmatprep.subr.bf16.mxu0 %v1776_v36 }
  0x9b   :  { %1453 = vmatpush3.bf16.msra.mxu1 %v1560_v63  ;;  %v1592_v63 = vld [vmem:[#allocation10 + $0x84] ss:$20 sps:$4 sm:$0xff]  }
  0x9c   :  { %1435 = vmatmul.mubr.bf16.vlgmr.msra.gmra.mrb[4].mxu0 %v116_v55  ;;  %1083 = vmatprep.subr.bf16.mxu1 %v1571_v35 }
  0x9d   :  { %1474 = vmatprep.mubr.msk.bf16.mxu0 %vm1777_vm0, %v1776_v36  ;;  %1459 = vmatpush3.bf16.msra.mxu0 %v1561_v0  ;;  %v1590_v0 = vld [vmem:[#allocation10 + $0x80] ss:$20 sps:$4 sm:$0xff]  }
  0x9e   :  { %1460 = vmatprep.subr.bf16.mxu0 %v1776_v36 }
  0xa1   :  { %1461 = vmatpush3.bf16.msra.mxu0 %v1562_v1  ;;  %v1598_v1 = vld [vmem:[#allocation10 + $0xac] ss:$20 sps:$4 sm:$0xff]  }
  0xa2   :  { %1462 = vmatprep.subr.bf16.mxu0 %v1776_v36 }
  0xa5   :  { %1463 = vmatpush3.bf16.msra.mxu0 %v1563_v2  ;;  %v1596_v2 = vld [vmem:[#allocation10 + $0xa8] ss:$20 sps:$4 sm:$0xff]  }
  0xa6   :  { %1464 = vmatprep.subr.bf16.mxu0 %v1776_v36 }
  0xa9   :  { %1465 = vmatpush3.bf16.msra.mxu0 %v1564_v3  ;;  %v1604_v3 = vld [vmem:[#allocation10 + $0xd4] ss:$20 sps:$4 sm:$0xff]  }
  0xaa   :  { %1466 = vmatprep.subr.bf16.mxu0 %v1776_v36 }
  0xad   :  { %1467 = vmatpush3.bf16.msra.mxu0 %v1565_v4  ;;  %v1602_v4 = vld [vmem:[#allocation10 + $0xd0] ss:$20 sps:$4 sm:$0xff]  }
  0xae   :  { %1468 = vmatprep.subr.bf16.mxu0 %v1776_v36 }
  0xb1   :  { %1469 = vmatpush3.bf16.msra.mxu0 %v1566_v5  ;;  %v1607_v5 = vld [vmem:[#allocation10 + $0xf4] ss:$20 sps:$4 sm:$0xff]  }
  0xb2   :  { %1470 = vmatprep.subr.bf16.mxu0 %v1776_v36 }
  0xb5   :  { %1471 = vmatpush3.bf16.msra.mxu0 %v1567_v32  ;;  %v850_v32 = vlaneseq }
  0xb6   :  { %1472 = vmatprep.subr.bf16.mxu0 %v1776_v36 }
  0xb9   :  { %1473 = vmatpush3.bf16.msra.mxu0 %v1568_v33  ;;  %v851_v33 = vshrl.u32 %v850_v32, 7 }
  0xba   :  { %1126 = vmatprep.subr.bf16.mxu0 %v1574_v37  ;;  %v848_v37 = vld [vmem:[%s1977_s8] sm:$0x1f]  ;;  %s1779_s8 = smov [#allocation11]  }
  0xbb   :  { %v860_v35 = vsub.s32 2, %v851_v33  ;;  %s1225_s14 = sshll.u32 %s1779_s8, 4  ;;  %s1226_s14 = int_to_ptr.vmem [resolvable:$true] %s1225_s14 }
  0xbc   :  { %s1735_s15 = scalar_lea.vmem %s1226_s14, 1280  ;;  %p1740_p13 = scmp.lt.s32.totalorder %s1226_s14, %s1226_s14 }
  0xbd   :  { %p1736_p12 = scmp.ne.s32.totalorder %s1226_s14, %s1735_s15  ;;  %p1741_p0 = scmp.lt.s32.totalorder %s1735_s15, %s1735_s15 }
  0xbf   :  { %p1742_p1 = por %p1741_p0, %p1740_p13 }
  0xc1   :  { %p1743_p2 = pnand %p1742_p1, %p1736_p12 }
 0x14f   :  { %v1354_v6 = vpop.f32.mrb[0].mxu0 }
 0x150   :  { %v1355_v8 = vpop.f32.mrb[1].mxu0 }
 0x151   :  { %v1356_v9 = vadd.f32 %v1355_v8, %v1354_v6  ;;  %v1357_v10 = vpop.f32.mrb[2].mxu0  ;;  %v1376_v11 = vpop.f32.mrb[0].mxu1  ;;  %v1605_v6 = vld [vmem:[#allocation10 + $0xf0] ss:$20 sps:$4 sm:$0xff]   ;;  %v1608_v8 = vld [vmem:[#allocation10 + $0xf8] ss:$20 sps:$4 sm:$0xff]  }
 0x152   :  { %v1358_v12 = vpop.f32.mrb[3].mxu0  ;;  %v1377_v13 = vpop.f32.mrb[1].mxu1 }
 0x153   :  { %v479_v14 = vadd.f32 %v1356_v9, %v1239_v7  ;;  %v1359_v15 = vadd.f32 %v1358_v12, %v1357_v10  ;;  %v1378_v16 = vadd.f32 %v1377_v13, %v1376_v11  ;;  %v1379_v17 = vpop.f32.mrb[2].mxu1  ;;  %v1613_v9 = vld [vmem:[#allocation10 + $0x11c] ss:$20 sps:$4 sm:$0xff]   ;;  %v1611_v10 = vld [vmem:[#allocation10 + $0x118] ss:$20 sps:$4 sm:$0xff]   ;;  %v1778_v13 = vmov 0  }
 0x154   :  { %v1380_v18 = vpop.f32.mrb[3].mxu1  ;;  %v1616_v11 = vld [vmem:[#allocation10 + $0x124] ss:$20 sps:$4 sm:$0xff]   ;;  %v1614_v12 = vld [vmem:[#allocation10 + $0x120] ss:$20 sps:$4 sm:$0xff]  }
 0x155   :  { %v482_v19 = vadd.f32 %v1359_v15, %v1239_v7  ;;  %v1381_v20 = vadd.f32 %v1380_v18, %v1379_v17  ;;  %v520_v21 = vadd.f32 %v1378_v16, %v479_v14  ;;  %v1610_v7 = vld [vmem:[#allocation10 + $0xfc] ss:$20 sps:$4 sm:$0xff]  }
 0x156   :  { %v1289_v14 = vld [vmem:[%s1975_s6] ss:$0 sm:$0xff] }
 0x157   :  { %v523_v22 = vadd.f32 %v1381_v20, %v482_v19 }
 0x16f   :  { %v560_v23 = vpop.f32.mrb[4].mxu0 }
 0x170   :  { %v561_v24 = vadd.f32 %v560_v23, %v520_v21  ;;  %v1436_v25 = vpop.f32.mrb[5].mxu0  ;;  %v1617_v23 = vld [vmem:[#allocation10 + $0x10] ss:$20 sps:$4 sm:$0xff]  }
 0x171   :  { %v563_v26 = vpop.f32.mrb[6].mxu0  ;;  %v1618_v25 = vld [vmem:[#allocation10 + $0x38] ss:$20 sps:$4 sm:$0xff]  }
 0x172   :  { %v564_v27 = vadd.f32 %v563_v26, %v523_v22  ;;  %v1437_v28 = vpop.f32.mrb[7].mxu0  ;;  %v567_v29 = vmax.f32 %v561_v24, 0.0  ;;  %v1619_v26 = vld [vmem:[#allocation10 + $0x60] ss:$20 sps:$4 sm:$0xff]  }
 0x173   :  { %v1621_v28 = vld [vmem:[#allocation10 + $0xb0] ss:$20 sps:$4 sm:$0xff]  }
 0x174   :  { %v568_v30 = vmax.f32 %v564_v27, 0.0  ;;  %v1620_v27 = vld [vmem:[#allocation10 + $0x88] ss:$20 sps:$4 sm:$0xff]  }
 0x176   :  { %v569_v31 = vpack.c.bf16 %v568_v30, %v567_v29  ;;  %v1622_v29 = vld [vmem:[#allocation10 + $0xd8] ss:$20 sps:$4 sm:$0xff]   ;;  %v1623_v30 = vld [vmem:[#allocation10 + $0x100] ss:$20 sps:$4 sm:$0xff]  }
 0x178   :  { %1455 = vmatmul.mubr.bf16.vlgmr.msra.gmra.mrb[4].mxu1 %v569_v31  ;;  %v1624_v31 = vld [vmem:[#allocation10 + $0x128] ss:$20 sps:$4 sm:$0xff]  }
 0x179   :  { %1084 = vmatpush1.bf16.msra.mxu1 %v1569_v34  ;;  %1115 = vmatprep.mubr.bf16.mxu1 %v1778_v13  ;;  %v852_v34 = vsub.s32 0, %v851_v33 }
 0x17a   :  { %1085 = vmatprep.subr.bf16.mxu1 %v1577_v38  ;;  %v856_v38 = vsub.s32 1, %v851_v33 }
 0x17d   :  { %1086 = vmatpush1.bf16.msra.mxu1 %v1575_v39  ;;  %v864_v39 = vsub.s32 3, %v851_v33 }
 0x17e   :  { %1087 = vmatprep.subr.bf16.mxu1 %v1583_v40  ;;  %v853_v40 = vrot.slane %v848_v37, %v852_v34 }
 0x181   :  { %1088 = vmatpush1.bf16.msra.mxu1 %v1581_v41  ;;  %v861_v41 = vrot.slane %v848_v37, %v860_v35 }
 0x182   :  { %1089 = vmatprep.subr.bf16.mxu1 %v1589_v42  ;;  %v857_v42 = vrot.slane %v848_v37, %v856_v38 }
 0x185   :  { %1090 = vmatpush1.bf16.msra.mxu1 %v1587_v43  ;;  %v865_v43 = vrot.slane %v848_v37, %v864_v39 }
 0x186   :  { %1091 = vmatprep.subr.bf16.mxu1 %v1595_v44 }
 0x189   :  { %1092 = vmatpush1.bf16.msra.mxu1 %v1593_v45 }
 0x18a   :  { %1093 = vmatprep.subr.bf16.mxu1 %v1601_v46 }
 0x18d   :  { %1094 = vmatpush1.bf16.msra.mxu1 %v1599_v47 }
 0x18e   :  { %1095 = vmatprep.subr.bf16.mxu1 %v1607_v5 }
 0x191   :  { %1096 = vmatpush1.bf16.msra.mxu1 %v1605_v6 }
 0x192   :  { %1097 = vmatprep.subr.bf16.mxu1 %v1613_v9 }
 0x195   :  { %1098 = vmatpush1.bf16.msra.mxu1 %v1611_v10 }
 0x196   :  { %1478 = vmatprep.subr.bf16.mxu1 %v1776_v36 }
 0x24b   :  { %v675_v49 = vpop.f32.mrb[4].mxu1 }
 0x24c   :  { %v676_v50 = vadd.f32 %v1280_v48, %v675_v49  ;;  %v1456_v51 = vpop.f32.mrb[5].mxu1 }
 0x24d   :  { %v678_v52 = vpop.f32.mrb[6].mxu1 }
 0x24e   :  { %v679_v53 = vadd.f32 %v1280_v48, %v678_v52  ;;  %v1457_v54 = vpop.f32.mrb[7].mxu1  ;;  %v682_v55 = vmax.f32 %v676_v50, 0.0 }
 0x250   :  { %v683_v56 = vmax.f32 %v679_v53, 0.0 }
 0x252   :  { %v684_v58 = vpack.c.bf16 %v683_v56, %v682_v55 }
 0x254   :  { %1475 = vmatmul.mubr.bf16.vlgmr.msra.gmra.mrb[8].mxu0 %v684_v58 }
 0x255   :  { %1127 = vmatpush1.bf16.msra.mxu0 %v1572_v57  ;;  %1158 = vmatprep.mubr.bf16.mxu0 %v1778_v13 }
 0x256   :  { %1128 = vmatprep.subr.bf16.mxu0 %v1580_v59  ;;  %v868_v59 = vsub.s32 4, %v851_v33 }
 0x259   :  { %1129 = vmatpush1.bf16.msra.mxu0 %v1578_v60  ;;  %v869_v60 = vrot.slane %v848_v37, %v868_v59 }
 0x25a   :  { %1130 = vmatprep.subr.bf16.mxu0 %v1586_v61 }
 0x25d   :  { %1131 = vmatpush1.bf16.msra.mxu0 %v1584_v62 }
 0x25e   :  { %1132 = vmatprep.subr.bf16.mxu0 %v1592_v63 }
 0x261   :  { %1133 = vmatpush1.bf16.msra.mxu0 %v1590_v0 }
 0x262   :  { %1134 = vmatprep.subr.bf16.mxu0 %v1598_v1 }
 0x265   :  { %1135 = vmatpush1.bf16.msra.mxu0 %v1596_v2 }
 0x266   :  { %1136 = vmatprep.subr.bf16.mxu0 %v1604_v3 }
 0x269   :  { %1137 = vmatpush1.bf16.msra.mxu0 %v1602_v4 }
 0x26a   :  { %1138 = vmatprep.subr.bf16.mxu0 %v1610_v7 }
 0x26d   :  { %1139 = vmatpush1.bf16.msra.mxu0 %v1608_v8 }
 0x26e   :  { %1140 = vmatprep.subr.bf16.mxu0 %v1616_v11 }
 0x271   :  { %1141 = vmatpush1.bf16.msra.mxu0 %v1614_v12 }
 0x327   :  { %v790_v15 = vpop.f32.mrb[8].mxu0 }
 0x328   :  { %v791_v16 = vadd.f32 %v1289_v14, %v790_v15  ;;  %v1476_v17 = vpop.f32.mrb[9].mxu0 }
 0x329   :  { %v793_v18 = vpop.f32.mrb[10].mxu0 }
 0x32a   :  { %v794_v19 = vadd.f32 %v1289_v14, %v793_v18  ;;  %v1477_v20 = vpop.f32.mrb[11].mxu0  ;;  %v797_v21 = vmax.f32 %v791_v16, 0.0 }
 0x32c   :  { %v798_v22 = vmax.f32 %v794_v19, 0.0 }
 0x32e   :  { %v799_v24 = vpack.c.bf16 %v798_v22, %v797_v21 }
 0x330   :  { %1116 = vmatmul.mubr.bf16.vlgmr.msra.gmra.mrb[8].mxu1 %v799_v24  ;;  %1159 = vmatmul.mubr.bf16.vlgmr.msra.gmra.mrb[12].mxu0 %v799_v24 }
 0x331   :  { %1479 = vmatpush3.bf16.msra.mxu1 %v1617_v23  ;;  %1494 = vmatprep.mubr.msk.bf16.mxu1 %vm1777_vm0, %v1776_v36 }
 0x332   :  { %1480 = vmatprep.subr.bf16.mxu1 %v1776_v36 }
 0x335   :  { %1481 = vmatpush3.bf16.msra.mxu1 %v1618_v25 }
 0x336   :  { %1482 = vmatprep.subr.bf16.mxu1 %v1776_v36 }
 0x339   :  { %1483 = vmatpush3.bf16.msra.mxu1 %v1619_v26 }
 0x33a   :  { %1484 = vmatprep.subr.bf16.mxu1 %v1776_v36 }
 0x33d   :  { %1485 = vmatpush3.bf16.msra.mxu1 %v1620_v27 }
 0x33e   :  { %1486 = vmatprep.subr.bf16.mxu1 %v1776_v36 }
 0x341   :  { %1487 = vmatpush3.bf16.msra.mxu1 %v1621_v28 }
 0x342   :  { %1488 = vmatprep.subr.bf16.mxu1 %v1776_v36 }
 0x345   :  { %1489 = vmatpush3.bf16.msra.mxu1 %v1622_v29 }
 0x346   :  { %1490 = vmatprep.subr.bf16.mxu1 %v1776_v36 }
 0x349   :  { %1491 = vmatpush3.bf16.msra.mxu1 %v1623_v30 }
 0x34a   :  { %1492 = vmatprep.subr.bf16.mxu1 %v1776_v36 }
 0x34d   :  { %1493 = vmatpush3.bf16.msra.mxu1 %v1624_v31 }
 0x350   :  { %1495 = vmatmul.mubr.bf16.vlgmr.msra.gmra.mrb[12].mxu1 %v799_v24 }
 0x403   :  { %v1117_v44 = vpop.f32.mrb[8].mxu1  ;;  %v1160_v45 = vpop.f32.mrb[12].mxu0 }
 0x404   :  { %v1118_v46 = vadd.f32 %v1117_v44, %v853_v40  ;;  %v1161_v36 = vadd.f32 %v1160_v45, %v861_v41  ;;  %v1119_v47 = vpop.f32.mrb[9].mxu1  ;;  %v1162_v48 = vpop.f32.mrb[13].mxu0 }
 0x405   :  { %v1120_v49 = vadd.f32 %v1119_v47, %v857_v42  ;;  %v1163_v50 = vadd.f32 %v1162_v48, %v865_v43  ;;  %v1121_v51 = vpop.f32.mrb[10].mxu1  ;;  %v1164_v52 = vpop.f32.mrb[14].mxu0 }
 0x406   :  { %1210 = vst [vmem:[#allocation11] sm:$0xff] %v1118_v46  ;;  %1212 = vst [vmem:[#allocation11 + $0x10] sm:$0xff] %v1161_v36  ;;  %v1122_v53 = vadd.f32 %v1121_v51, %v853_v40  ;;  %v1165_v54 = vadd.f32 %v1164_v52, %v861_v41  ;;  %v1123_v55 = vpop.f32.mrb[11].mxu1  ;;  %v1166_v56 = vpop.f32.mrb[15].mxu0 }
 0x407   :  { %1211 = vst [vmem:[#allocation11 + $0x8] sm:$0xff] %v1120_v49  ;;  %1213 = vst [vmem:[#allocation11 + $0x18] sm:$0xff] %v1163_v50  ;;  %v1124_v57 = vadd.f32 %v1123_v55, %v857_v42  ;;  %v1167_v58 = vadd.f32 %v1166_v56, %v865_v43 }
 0x408   :  { %1215 = vst [vmem:[#allocation11 + $0x28] sm:$0xff] %v1122_v53  ;;  %1217 = vst [vmem:[#allocation11 + $0x38] sm:$0xff] %v1165_v54 }
 0x409   :  { %1216 = vst [vmem:[#allocation11 + $0x30] sm:$0xff] %v1124_v57  ;;  %1218 = vst [vmem:[#allocation11 + $0x40] sm:$0xff] %v1167_v58 }
 0x423   :  { %v1203_v61 = vpop.f32.mrb[12].mxu1 }
 0x424   :  { %v1204_v62 = vadd.f32 %v1203_v61, %v869_v60  ;;  %v1496_v63 = vpop.f32.mrb[13].mxu1 }
 0x425   :  { %v1206_v0 = vpop.f32.mrb[14].mxu1 }
 0x426   :  { %1214 = vst [vmem:[#allocation11 + $0x20] sm:$0xff] %v1204_v62  ;;  %v1207_v1 = vadd.f32 %v1206_v0, %v869_v60  ;;  %v1497_v2 = vpop.f32.mrb[15].mxu1 }
 0x428   :  { %1219 = vst [vmem:[#allocation11 + $0x48] sm:$0xff] %v1207_v1 }
 0x429   :  { %1746 = shalt.err (!%p1743_p2)
}
 0x42a   :  { %s1747_s0 = scalar_lea.hbm %s1978_s9, 1280 }
 0x42b   :  { %p1748_p3 = scmp.ne.s32.totalorder %s1978_s9, %s1747_s0  ;;  %p1751_p4 = scmp.lt.u32.totalorder %s1747_s0, %s1978_s9 }
 0x42d   :  { %p1753_p5 = pnand %p1751_p4, %p1748_p3 }
 0x42f   :  { %1756 = shalt.err (!%p1753_p5)
}
 0x430   :  { %1231 = dma.vmem_to_hbm [thread:$0]  %s1226_s14, 1280, %s1978_s9, [#allocation4], %s1770_s5, %s1770_s5, %s1771_s24  }
 0x431   :  { %1763 = dma.done.wait [#allocation4], 1280  }
 0x432   :  { %1764 = vsyncadd [#allocation4], 4294966016 }
 0x433   :  { %1235 = vsyncpa [#allocation3], 1 }
 0x434   :  { %1236 = vsyncpa [#allocation6], 1 }
 0x435   :  { %1237 = vsyncpa [#allocation9], 1 }
 0x436   :  { %1238 = vsyncpa [#allocation4], 1 }

</bundles_post_ra>
